<compile_context>
chip_gen: v7x
topology: tpu7x:2x2x1
jax: 0.10.0
libtpu: 0.0.40
codegen_flags: <defaults>
</compile_context>

<pallas_src>
import functools

import jax
import jax.numpy as jnp
from jax import lax
from jax.experimental import pallas as pl
from jax.experimental.pallas import tpu as pltpu

_SUBLANES = 8
_LANES = 128
_GRAIN = _SUBLANES * _LANES      # 1024: one (8, 128) f32 vreg tile
_TILE_ROWS = 4096                # sublane rows per grid step (2 MiB f32 / input block)


def _round_up(v, m):
    return ((v + m - 1) // m) * m


def _int_pow(x, p):
    """x ** p for small positive integer p via exponentiation by squaring (VPU only)."""
    result = None
    base = x
    while p > 0:
        if p & 1:
            result = base if result is None else result * base
        p >>= 1
        if p:
            base = base * base
    return result if result is not None else jnp.ones_like(x)


def _focal_weight_times_bce(x, t, gamma):
    """(1 - pt)**gamma * BCE elementwise in f32 (alpha is folded in by the caller)."""
    x = x.astype(jnp.float32)
    t = t.astype(jnp.float32)
    e = jnp.exp(-jnp.abs(x))                              # in (0, 1]
    # 1 + e is in [1, 2]; plain log is as accurate as log1p here and keeps the
    # transcendental chain at 3 EUP ops/element.
    bce = jnp.maximum(x, 0.0) - x * t + jnp.log(1.0 + e)
    pt = jnp.exp(-bce)
    omp = 1.0 - pt
    g = float(gamma)
    if g == 0.0:
        w = jnp.ones_like(omp)
    elif g.is_integer() and 0 < g <= 16:
        w = _int_pow(omp, int(g))                         # gamma=2 -> omp*omp, no EUP pow
    else:
        w = omp ** g                                      # general (non-integer) gamma
    return w * bce


def _focal_loss_kernel(x_ref, t_ref, o_ref, *, gamma, tile_rows, valid_rows_last):
    focal = _focal_weight_times_bce(x_ref[...], t_ref[...], gamma)

    def _partial_sum(v):
        # (tile_rows, 128) -> (tile_rows//8, 8, 128) -> sum over leading axis.
        # Pure vreg adds on the VPU; the single cross-lane/sublane reduce is
        # deferred to the wrapper.
        return jnp.sum(v.reshape(tile_rows // _SUBLANES, _SUBLANES, _LANES), axis=0)

    o_ref[...] = _partial_sum(focal)

    if valid_rows_last is not None:
        # Only the final (partial) row-block needs masking; iota/compare/select
        # and the second reduce live in a cold pl.when path.  The masked store
        # must overwrite the unconditional store above (select keeps garbage /
        # NaN rows from leaking into the sum).
        @pl.when(pl.program_id(0) == pl.num_programs(0) - 1)
        def _mask_tail():
            rid = lax.broadcasted_iota(jnp.int32, (tile_rows, _LANES), 0)
            masked = jnp.where(rid < valid_rows_last, focal, 0.0)
            o_ref[...] = _partial_sum(masked)


def focal_loss(inputs, targets, alpha=0.25, gamma=2):
    """Pallas TPU implementation of FocalLoss.forward (returns a scalar)."""
    assert inputs.shape == targets.shape
    n = int(inputs.size)
    assert n > 0

    x_flat = jnp.ravel(inputs)
    t_flat = jnp.ravel(targets)

    # Split into a 1024-aligned prefix (streamed through the Pallas kernel; no
    # jnp.pad, no extra HBM round trip for aligned shapes) and a tiny tail
    # (< 1024 elements) folded in with plain jnp.
    aligned = (n // _GRAIN) * _GRAIN
    tail = n - aligned

    total = jnp.float32(0.0)

    if aligned:
        if tail:
            x2 = x_flat[:aligned]
            t2 = t_flat[:aligned]
        else:
            x2, t2 = x_flat, t_flat

        rows = aligned // _LANES                     # multiple of 8

        # Tile as big as possible (amortize per-step overhead), but keep the
        # grid at >= 2 steps whenever there is enough work so the "parallel"
        # axis has something to shard across both TensorCores on v7x.
        max_tile = _TILE_ROWS
        if rows >= 2 * _SUBLANES:
            max_tile = min(max_tile, _round_up(pl.cdiv(rows, 2), _SUBLANES))
        tile_rows = min(max_tile, rows)
        n_tiles = pl.cdiv(rows, tile_rows)

        # Valid rows of the final (possibly partial) block; None -> no masking.
        last_rows = rows - (n_tiles - 1) * tile_rows
        valid_rows_last = None if last_rows == tile_rows else int(last_rows)

        kernel = functools.partial(
            _focal_loss_kernel,
            gamma=gamma,
            tile_rows=tile_rows,
            valid_rows_last=valid_rows_last,
        )

        partials = pl.pallas_call(
            kernel,
            out_shape=jax.ShapeDtypeStruct((n_tiles * _SUBLANES, _LANES), jnp.float32),
            grid_spec=pltpu.PrefetchScalarGridSpec(
                num_scalar_prefetch=0,
                grid=(n_tiles,),
                in_specs=[
                    pl.BlockSpec((tile_rows, _LANES), lambda i: (i, 0)),
                    pl.BlockSpec((tile_rows, _LANES), lambda i: (i, 0)),
                ],
                out_specs=pl.BlockSpec((_SUBLANES, _LANES), lambda i: (i, 0)),
            ),
            compiler_params=pltpu.CompilerParams(
                # No carried state -> the grid axis is truly parallel (megacore
                # sharding on v7x; verify the split in the Mosaic dump).
                dimension_semantics=("parallel",),
                # Headroom for the 2 MiB blocks (v5e scoped-VMEM default is 16 MiB).
                vmem_limit_bytes=32 * 1024 * 1024,
            ),
        )(x2.reshape(rows, _LANES), t2.reshape(rows, _LANES))

        total = total + jnp.sum(partials)

    if tail:
        total = total + jnp.sum(
            _focal_weight_times_bce(x_flat[aligned:], t_flat[aligned:], gamma))

    # Loss is linear in alpha: fold alpha and the mean normalization in once.
    return (jnp.float32(alpha) * total) / jnp.float32(n)


def _focal_loss_ref(inputs, targets, alpha=0.25, gamma=2):
    x = inputs.astype(jnp.float32)
    t = targets.astype(jnp.float32)
    bce = jnp.maximum(x, 0.0) - x * t + jnp.log1p(jnp.exp(-jnp.abs(x)))
    pt = jnp.exp(-bce)
    return jnp.mean(alpha * (1.0 - pt) ** gamma * bce)


if __name__ == "__main__":
    key = jax.random.PRNGKey(0)
    keys = jax.random.split(key, 6)

    def _check(shape, kx, kt):
        logits = jax.random.normal(kx, shape, dtype=jnp.float32)
        targets = jax.random.bernoulli(kt, 0.3, shape).astype(jnp.float32)
        loss = jax.block_until_ready(focal_loss(logits, targets, alpha=0.25, gamma=2))
        ref = _focal_loss_ref(logits, targets, alpha=0.25, gamma=2)
        assert jnp.allclose(loss, ref, rtol=1e-4, atol=1e-6), (shape, loss, ref)

    # Main small NCHW case (1024-aligned; 2-step grid, no mask, no tail).
    _check((2, 4, 16, 16), keys[0], keys[1])
    # Ragged element count -> exercises the partial-block mask + jnp tail path.
    _check((2, 3, 37, 53), keys[2], keys[3])
    # Larger aligned case -> exercises pipelined multi-row tiles.
    _check((6, 8, 80, 80), keys[4], keys[5])

    print("KERNEL_OK")
</pallas_src>

<mosaic_0001>
module attributes {stable_mosaic.version = 11 : i64} {
  func.func @_focal_loss_kernel(%arg0: i32, %arg1: memref<8x128xf32, #tpu.memory_space<vmem>>, %arg2: memref<8x128xf32, #tpu.memory_space<vmem>>, %arg3: memref<8x128xf32, #tpu.memory_space<vmem>>) attributes {dimension_semantics = [#tpu.dimension_semantics<parallel>], iteration_bounds = array<i64: 2>, scalar_prefetch = 0 : i64, scratch_operands = 0 : i64, tpu.core_type = #tpu.core_type<tc>, window_params = [{transform_indices = @transform_0, window_bounds = array<i64: 8, 128>}, {transform_indices = @transform_1, window_bounds = array<i64: 8, 128>}, {transform_indices = @transform_2, window_bounds = array<i64: 8, 128>}]} {
    %c0 = arith.constant 0 : index
    %c0_0 = arith.constant 0 : index
    %0 = vector.load %arg1[%c0, %c0_0] : memref<8x128xf32, #tpu.memory_space<vmem>>, vector<8x128xf32>
    %c0_1 = arith.constant 0 : index
    %c0_2 = arith.constant 0 : index
    %1 = vector.load %arg2[%c0_1, %c0_2] : memref<8x128xf32, #tpu.memory_space<vmem>>, vector<8x128xf32>
    %2 = math.absf %0 : vector<8x128xf32>
    %cst = arith.constant 0.000000e+00 : f32
    %3 = vector.broadcast %cst : f32 to vector<8x128xf32>
    %4 = arith.subf %3, %2 : vector<8x128xf32>
    %5 = math.exp %4 : vector<8x128xf32>
    %cst_3 = arith.constant 0.000000e+00 : f32
    %6 = vector.broadcast %cst_3 : f32 to vector<8x128xf32>
    %7 = arith.maximumf %0, %6 : vector<8x128xf32>
    %8 = arith.mulf %0, %1 : vector<8x128xf32>
    %9 = arith.subf %7, %8 : vector<8x128xf32>
    %cst_4 = arith.constant 1.000000e+00 : f32
    %10 = vector.broadcast %cst_4 : f32 to vector<8x128xf32>
    %11 = arith.addf %10, %5 : vector<8x128xf32>
    %12 = math.log %11 : vector<8x128xf32>
    %13 = arith.addf %9, %12 : vector<8x128xf32>
    %cst_5 = arith.constant 0.000000e+00 : f32
    %14 = vector.broadcast %cst_5 : f32 to vector<8x128xf32>
    %15 = arith.subf %14, %13 : vector<8x128xf32>
    %16 = math.exp %15 : vector<8x128xf32>
    %cst_6 = arith.constant 1.000000e+00 : f32
    %17 = vector.broadcast %cst_6 : f32 to vector<8x128xf32>
    %18 = arith.subf %17, %16 : vector<8x128xf32>
    %19 = arith.mulf %18, %18 : vector<8x128xf32>
    %20 = arith.mulf %19, %13 : vector<8x128xf32>
    %21 = vector.shape_cast %20 : vector<8x128xf32> to vector<1x8x128xf32>
    %cst_7 = arith.constant dense<0.000000e+00> : vector<8x128xf32>
    %22 = vector.multi_reduction <add>, %21, %cst_7 [0] : vector<1x8x128xf32> to vector<8x128xf32>
    %c0_8 = arith.constant 0 : index
    %c0_9 = arith.constant 0 : index
    %23 = vector.load %arg3[%c0_8, %c0_9] : memref<8x128xf32, #tpu.memory_space<vmem>>, vector<8x128xf32>
    tpu.vector_store %arg3[%c0_8, %c0_9], %22 {strides = array<i32>} : memref<8x128xf32, #tpu.memory_space<vmem>>, vector<8x128xf32>,
    return
  }
  func.func @transform_0(%arg0: i32) -> (i32, i32) {
    %c0_i32 = arith.constant 0 : i32
    %c0_i32_0 = arith.constant 0 : i32
    return %arg0, %c0_i32 : i32, i32
  }
  func.func @transform_1(%arg0: i32) -> (i32, i32) {
    %c0_i32 = arith.constant 0 : i32
    %c0_i32_0 = arith.constant 0 : i32
    return %arg0, %c0_i32 : i32, i32
  }
  func.func @transform_2(%arg0: i32) -> (i32, i32) {
    %c0_i32 = arith.constant 0 : i32
    %c0_i32_0 = arith.constant 0 : i32
    return %arg0, %c0_i32 : i32, i32
  }
}

</mosaic_0001>

<bundles_post_ra>
// kernel: tpu_custom_call.1
= control target key start
LH: loop header
LB: loop body
LE: loop exit
PB: predicated region body
PF: predicated region fallthrough
CT: control target
= control target key end

     0   :  { %7 = vsyncpa [#allocation3], 0  ;;  %s760_s0 = inlined_call_operand.hbm [shape: f32[16,128], index: 0, kind: input, shape index: {}]   ;;  %s761_s1 = inlined_call_operand.hbm [shape: f32[16,128], index: 1, kind: input, shape index: {}]   ;;  %s762_s2 = inlined_call_operand.hbm [shape: f32[16,128], index: 2, kind: output, shape index: {}]  }
   0x1   :  { %9 = vsyncpa [#allocation3 + $0x1], 0 }
   0x2   :  { %10 = vsyncpa [#allocation6], 0 }
   0x3   :  { %12 = vsyncpa [#allocation6 + $0x1], 0 }
   0x4   :  { %13 = vsyncpa [#allocation4], 0 }
   0x5   :  { %15 = vsyncpa [#allocation4 + $0x1], 0  ;;  %s546_s9 = smov 0   ;;  %s548_s10 = smov 0  }
   0x6   :  { %s550_s11 = smov 0   ;;  %s552_s12 = smov 0  }
   0x7 LB: > { %s567_s13 = sadd.s32 4294967295, %s526_s12   ;;  %s324_s14 = sadd.s32 4294967294, %s526_s12   ;;  %s526_s12 = sphi %s552_s12, %s781_s12   ;;  %s522_s11 = sphi %s550_s11, %s780_s11   ;;  %s518_s10 = sphi %s548_s10, %s779_s10   ;;  %s514_s9 = sphi %s546_s9, %s778_s9  }
   0x8   : > { %s571_s15 = sadd.s32 1, %s526_s12   ;;  %s28_s16 = sadd.s32 1, %s522_s11 }
   0x9   : > { %s25_s17 = ssub.s32 %s526_s12, %s571_s15  ;;  %p35_p0 = scmp.ne.s32.totalorder %s522_s11, %s518_s10 }
   0xa   : > { %p26_p1 = scmp.eq.s32.totalorder %s25_s17, 0  ;;  %p36_p2 = scmp.eq.s32.totalorder %s526_s12, 0 }
   0xb   : > { %p41_p3 = scmp.ne.s32.totalorder %s518_s10, %s514_s9  ;;  %p42_p4 = scmp.eq.s32.totalorder %s567_s13, 0 }
   0xc   : > { %s583_s18 = scalar_select %p26_p1, %s522_s11, %s28_s16  }
   0xd   : > { %p585_p5 = por %p36_p2, %p35_p0  ;;  %p589_p6 = por %p42_p4, %p41_p3 }
   0xe   : > { %p91_p7 = scmp.eq.s32.totalorder %s567_s13, 1  ;;  %p97_p8 = scmp.eq.s32.totalorder %s324_s14, 1 }
   0xf   : > { %s766_s20 = scalar_select %p589_p6, 1, 0 }
  0x10   : > { %p356_p10 = scmp.lt.s32.totalorder %s526_s12, 2  ;;  %p596_p11 = por %p91_p7, %p35_p0 }
  0x11   : > { %p600_p12 = por %p97_p8, %p41_p3  ;;  %s605_s23 = sand.u32 1, %s522_s11  }
  0x12   : > { %s767_s21 = scalar_select %p596_p11, 1, 0 }
  0x13   : > { %s768_s22 = scalar_select %p600_p12, 1, 0 }
  0x14   : > { %s328_s24 = sshll.u32 %s526_s12, 7  ;;  %s327_s25 = sshll.u32 %s605_s23, 3 }
  0x15   : > { %s614_s28 = scalar_lea.hbm %s760_s0, %s328_s24  ;;  %s121_s29 = scalar_lea.vmem [#allocation2], %s327_s25 }
  0x16   : > { %s128_s30 = sshll.u32 %s121_s29, 4  ;;  %p620_p13 = pnand %p356_p10, %p585_p5  ;;  %s624_s30 = int_to_ptr.vmem [resolvable:$true] %s128_s30 }
  0x17   : > { %s118_s4 = scalar_lea.sflag [#allocation3], %s605_s23  ;;  %s396_s5 = scalar_lea.hbm %s614_s28, 128 }
  0x18   : > { %p397_p2 = scmp.ne.s32.totalorder %s614_s28, %s396_s5  ;;  %p398_p3 = pneg %p620_p13 }
  0x19   : > { %s401_s8 = scalar_lea.hbm %s760_s0, 256  ;;  %p402_p5 = scmp.lt.u32.totalorder %s614_s28, %s760_s0 }
  0x1a   : > { %p399_p4 = pnand %p398_p3, %p397_p2  ;;  %p403_p8 = scmp.lt.u32.totalorder %s401_s8, %s396_s5 }
  0x1b   : > { %p405_p9 = scmp.lt.u32.totalorder %s396_s5, %s614_s28 }
  0x1c   : > { %p400_p7 = pneg %p399_p4  ;;  %p404_p10 = por %p403_p8, %p402_p5 }
  0x1e   : > { %p406_p0 = por %p405_p9, %p404_p10 }
  0x20   : > { %p407_p1 = pnand %p406_p0, %p400_p7 }
  0x22   : > { %410 = shalt.err (!%p407_p1)
}
  0x23   : > { %s411_s17 = scalar_lea.vmem %s624_s30, 128  ;;  %s528_s19 = smov [#allocation2]  }
  0x24   : > { %p412_p2 = scmp.ne.s32.totalorder %s624_s30, %s411_s17  ;;  %s416_s26 = sshll.u32 %s528_s19, 4  ;;  %s417_s26 = int_to_ptr.vmem [resolvable:$false] %s416_s26 }
  0x25   : > { %s418_s27 = scalar_lea.vmem %s417_s26, 256  ;;  %p419_p11 = scmp.lt.s32.totalorder %s624_s30, %s417_s26 }
  0x26   : > { %p414_p4 = pnand %p412_p2, %p398_p3  ;;  %p420_p5 = scmp.lt.s32.totalorder %s418_s27, %s411_s17 }
  0x28   : > { %p415_p12 = pneg %p414_p4  ;;  %p421_p8 = por %p420_p5, %p419_p11 }
  0x2a   : > { %p422_p9 = pnand %p421_p8, %p415_p12 }
  0x2c   : > { %425 = shalt.err (!%p422_p9)
}
  0x2d   : > { %348 = dma.hbm_to_vmem [thread:$0]  (!%p620_p13), %s614_s28, 128, %s624_s30, %s118_s4  }
  0x2e   : > { %p770_p0 = scmp.lt.s32.totalorder %s526_s12, 3  ;;  %p771_p1 = scmp.ge.s32.totalorder %s526_s12, 1 }
  0x2f   : > { %s667_s7 = scalar_lea.hbm %s761_s1, %s328_s24  ;;  %s139_s8 = scalar_lea.vmem [#allocation5], %s327_s25 }
  0x30   : > { %p658_p7 = pnand %p771_p1, %p770_p0  ;;  %s146_s14 = sshll.u32 %s139_s8, 4  ;;  %s147_s14 = int_to_ptr.vmem [resolvable:$true] %s146_s14 }
  0x31   : > { %s136_s28 = scalar_lea.sflag [#allocation6], %s605_s23  ;;  %s426_s30 = scalar_lea.hbm %s667_s7, 128 }
  0x32   : > { %s772_s29 = scalar_select %p658_p7, 1, 0 }
  0x33   : > { %p427_p11 = scmp.ne.s32.totalorder %s667_s7, %s426_s30  ;;  %s431_s24 = scalar_lea.hbm %s761_s1, 256 }
  0x34   : > { %p432_p2 = scmp.lt.u32.totalorder %s667_s7, %s761_s1  ;;  %p433_p4 = scmp.lt.u32.totalorder %s431_s24, %s426_s30 }
  0x35   : > { %p429_p12 = pnand %p427_p11, %p398_p3  ;;  %p435_p8 = scmp.lt.u32.totalorder %s426_s30, %s667_s7 }
  0x36   : > { %p434_p5 = por %p433_p4, %p432_p2 }
  0x37   : > { %p430_p10 = pneg %p429_p12 }
  0x38   : > { %p436_p9 = por %p435_p8, %p434_p5 }
  0x3a   : > { %p437_p0 = pnand %p436_p9, %p430_p10 }
  0x3c   : > { %440 = shalt.err (!%p437_p0)
}
  0x3d   : > { %s441_s23 = scalar_lea.vmem %s147_s14, 128  ;;  %s529_s25 = smov [#allocation5]  }
  0x3e   : > { %p442_p1 = scmp.ne.s32.totalorder %s147_s14, %s441_s23  ;;  %s446_s26 = sshll.u32 %s529_s25, 4  ;;  %s447_s26 = int_to_ptr.vmem [resolvable:$false] %s446_s26 }
  0x3f   : > { %s448_s27 = scalar_lea.vmem %s447_s26, 256  ;;  %p449_p6 = scmp.lt.s32.totalorder %s147_s14, %s447_s26 }
  0x40   : > { %p444_p11 = pnand %p442_p1, %p398_p3  ;;  %p450_p7 = scmp.lt.s32.totalorder %s448_s27, %s441_s23 }
  0x42   : > { %p445_p12 = pneg %p444_p11  ;;  %p451_p2 = por %p450_p7, %p449_p6 }
  0x44   : > { %p452_p4 = pnand %p451_p2, %p445_p12 }
  0x46   : > { %455 = shalt.err (!%p452_p4)
}
  0x47   : > { %351 = dma.hbm_to_vmem [thread:$0]  (!%p620_p13), %s667_s7, 128, %s147_s14, %s136_s28  }
  0x48   : > { %p773_p10 = scmp.ne.s32.totalorder %s772_s29, 0 }
  0x49   : > { %s694_s5 = sand.u32 (!%p773_p10), 1, %s518_s10   ;;  %p774_p6 = scmp.ne.s32.totalorder (!%p773_p10), %s766_s20, 0 }
  0x4a   : > { %155 = sbr.rel (%p773_p10) target bundleno = 154 (0x9a), region = 28  ;;  %s697_s6 = sshll.u32 (!%p773_p10), %s694_s5, 3 }
  0x4b   : > { %s158_s8 = scalar_lea.sflag (!%p773_p10), [#allocation3], %s694_s5  ;;  %s161_s30 = scalar_lea.vmem (!%p773_p10), [#allocation2], %s697_s6 }
  0x51   : > { %501 = dma.done.wait (%p774_p6), %s158_s8, 128  }
  0x52   : > { %503 = vsyncadd (%p774_p6), %s158_s8, 4294967168  ;;  %s167_s3 = scalar_lea.sflag [#allocation6], %s694_s5  ;;  %s170_s29 = scalar_lea.vmem [#allocation5], %s697_s6 }
  0x53   : > { %505 = dma.done.wait (%p774_p6), %s167_s3, 128  }
  0x54   : > { %507 = vsyncadd (%p774_p6), %s167_s3, 4294967168  ;;  %v196_v0 = vld [vmem:[%s161_s30] sm:$0xff]  ;;  %v197_v6 = vld [vmem:[%s170_s29] sm:$0xff]  ;;  %s195_s20 = scalar_lea.vmem [#allocation7], %s697_s6  ;;  %s336_s14 = sshll.u32 %s567_s13, 7 }
  0x55   : > { %v198_v1 = vand.u32 2147483647, %v196_v0  ;;  %v202_v7 = vmax.f32 %v196_v0, 0.0  ;;  %v203_v8 = vmul.f32 %v197_v6, %v196_v0  ;;  %s231_s7 = sshll.u32 %s195_s20, 4  ;;  %s718_s16 = scalar_lea.hbm %s762_s2, %s336_s14  ;;  %s713_s7 = int_to_ptr.vmem [resolvable:$true] %s231_s7 }
  0x56   : > { %s218_s24 = scalar_lea.sflag [#allocation4], %s694_s5  ;;  %s456_s17 = scalar_lea.vmem %s713_s7, 128 }
  0x57   : > { %v199_v2 = vsub.f32 0.0, %v198_v1  ;;  %v204_v9 = vsub.f32 %v202_v7, %v203_v8  ;;  %p457_p13 = scmp.ne.s32.totalorder %s713_s7, %s456_s17  ;;  %p775_p3 = scmp.ne.s32.totalorder %s767_s21, 0 }
  0x58   : > { %s530_s13 = smov [#allocation7]  }
  0x59   : > { %v200_v3 = vmul.f32 1.442695, %v199_v2  ;;  %p458_p7 = pnand %p457_p13, %p775_p3  ;;  %s460_s19 = sshll.u32 %s530_s13, 4  ;;  %s461_s19 = int_to_ptr.vmem [resolvable:$false] %s460_s19 }
  0x5a   : > { %s462_s23 = scalar_lea.vmem %s461_s19, 256  ;;  %p463_p8 = scmp.lt.s32.totalorder %s713_s7, %s461_s19 }
  0x5b   : > { %390 = vpow2.f32 %v200_v3  ;;  %p459_p5 = pneg %p458_p7  ;;  %p464_p9 = scmp.lt.s32.totalorder %s462_s23, %s456_s17 }
  0x5d   : > { %p465_p0 = por %p464_p9, %p463_p8 }
  0x5f   : > { %p466_p1 = pnand %p465_p0, %p459_p5 }
  0x65   : > { %v391_v4 = vpop.eup %390 }
  0x66   : > { %v205_v5 = vadd.f32 1.0, %v391_v4 }
  0x68   : > { %392 = vlog2.f32 %v205_v5 }
  0x72   : > { %v393_v10 = vpop.eup %392 }
  0x73   : > { %v207_v11 = vmul.f32 0.6931472, %v393_v10 }
  0x75   : > { %v208_v12 = vadd.f32 %v207_v11, %v204_v9 }
  0x77   : > { %v209_v13 = vsub.f32 0.0, %v208_v12 }
  0x79   : > { %v210_v14 = vmul.f32 1.442695, %v209_v13 }
  0x7b   : > { %394 = vpow2.f32 %v210_v14 }
  0x85   : > { %v395_v15 = vpop.eup %394 }
  0x86   : > { %v212_v16 = vsub.f32 1.0, %v395_v15 }
  0x88   : > { %v213_v17 = vmul.f32 %v212_v16, %v212_v16 }
  0x8a   : > { %v214_v18 = vmul.f32 %v213_v17, %v208_v12 }
  0x8c   : > { %216 = vst [vmem:[%s195_s20] sm:$0xff] %v214_v18 }
  0x8d   : > { %469 = shalt.err (!%p466_p1)
}
  0x8e   : > { %s470_s25 = scalar_lea.hbm %s718_s16, 128  ;;  %s474_s5 = scalar_lea.hbm %s762_s2, 256 }
  0x8f   : > { %p471_p11 = scmp.ne.s32.totalorder %s718_s16, %s470_s25  ;;  %p475_p4 = scmp.lt.u32.totalorder %s718_s16, %s762_s2 }
  0x90   : > { %p476_p10 = scmp.lt.u32.totalorder %s474_s5, %s470_s25  ;;  %p478_p13 = scmp.lt.u32.totalorder %s470_s25, %s718_s16 }
  0x91   : > { %p472_p12 = pnand %p471_p11, %p775_p3 }
  0x92   : > { %p477_p6 = por %p476_p10, %p475_p4 }
  0x93   : > { %p473_p2 = pneg %p472_p12 }
  0x94   : > { %p479_p7 = por %p478_p13, %p477_p6 }
  0x96   : > { %p480_p5 = pnand %p479_p7, %p473_p2 }
  0x98   : > { %483 = shalt.err (!%p480_p5)
}
  0x99   : > { %343 = dma.vmem_to_hbm [thread:$0]  (%p775_p3), %s713_s7, 128, %s718_s16, %s218_s24  }
  0x9a PF: > { %s243_s30 = sand.u32 1, %s514_s9   ;;  %p776_p8 = scmp.ne.s32.totalorder %s768_s22, 0 }
  0x9b   : > { %p777_p9 = scmp.ge.s32.totalorder %s526_s12, 2  ;;  %s244_s3 = scalar_lea.sflag [#allocation4], %s243_s30 }
  0x9d   : > { %p353_p0 = pnand %p777_p9, %p776_p8 }
  0x9f   : > { %509 = dma.done.wait (!%p353_p0), %s244_s3, 128  }
  0xa0   : > { %511 = vsyncadd (!%p353_p0), %s244_s3, 4294967168  ;;  %p18_p1 = scmp.ge.s32.totalorder %s571_s15, 4   ;;  %s778_s9 = smov %s518_s10 }
  0xa1   : > { %s779_s10 = smov %s522_s11  ;;  %s780_s11 = smov %s583_s18 }
  0xa2   : > { %s781_s12 = smov %s571_s15  ;;  %20 = sbr.rel (!%p18_p1) target bundleno = 7 (0x7), region = 86 }
  0xa9   :  { %249 = vsyncpa [#allocation3], 1 }
  0xaa   :  { %251 = vsyncpa [#allocation3 + $0x1], 1 }
  0xab   :  { %252 = vsyncpa [#allocation6], 1 }
  0xac   :  { %254 = vsyncpa [#allocation6 + $0x1], 1 }
  0xad   :  { %255 = vsyncpa [#allocation4], 1 }
  0xae   :  { %257 = vsyncpa [#allocation4 + $0x1], 1 }

</bundles_post_ra>
